<compile_context>
chip_gen: v6e
topology: v6e:2x2x1
jax: 0.10.0
libtpu: 0.0.40
codegen_flags: <defaults>
</compile_context>

<pallas_src>
import functools

import jax
import jax.numpy as jnp
from jax import lax
from jax.experimental import pallas as pl
from jax.experimental.pallas import tpu as pltpu


def basic_block_kernel(x_ref, mask_ref, w1_ref, b1_ref, w2_ref, b2_ref, out_ref,
                       *, W, per_tap):
    # x_ref:    (Cp, L) f32   one batch group, L = images_per_block * H * W
    # mask_ref: (16, L) bf16  rows 0..8 = multiplicative border masks of the 9
    #                         taps (row 4 = centre = all ones), rows 9..15 pad
    # w*_ref:   per_tap -> (9, Cp, Cp) bf16 tap-major; else (Cp, 9*Cp) bf16
    # b*_ref:   (Cp, 1) f32   folded BN bias (zero in padded rows)
    # out_ref:  (Cp, L) f32
    L = x_ref.shape[1]
    x = x_ref[...]                               # f32, kept for the residual
    masks = mask_ref[...]                        # (16, L) bf16

    def conv3x3(a, w_ref):
        """3x3 same-padding conv of (Cp, L) activation `a` -> (Cp, L) f32."""

        def tap(src, t):
            dy, dx = t // 3 - 1, t % 3 - 1
            d = dy * W + dx                      # flat lane offset of the tap
            p = src if d == 0 else pltpu.roll(src, shift=(-d) % L, axis=1)
            # border / cross-image wrap-around killed by a 0/1 multiply
            return p if t == 4 else p * masks[t:t + 1, :]

        if per_tap:
            # Real-size path: no materialized (9*Cp, L) patch matrix; one small
            # matmul per tap accumulated in f32 (MRB accumulation on v7x),
            # rolls + masks run in bf16 and overlap the previous tap's push.
            ab = a.astype(jnp.bfloat16)
            acc = jnp.dot(w_ref[0], tap(ab, 0), preferred_element_type=jnp.float32)
            for t in range(1, 9):
                acc += jnp.dot(w_ref[t], tap(ab, t),
                               preferred_element_type=jnp.float32)
            return acc

        # Tiny-Cp path (toy shapes): K = Cp matmuls would starve the MXU, so
        # build the (9*Cp, L) patch matrix once and do a single K = 9*Cp matmul.
        patch = jnp.concatenate([tap(a, t) for t in range(9)], axis=0)
        return jnp.dot(w_ref[...], patch.astype(jnp.bfloat16),
                       preferred_element_type=jnp.float32)

    # conv1 + BN1 (scale folded into weights) + ReLU
    mid = jnp.maximum(conv3x3(x, w1_ref) + b1_ref[...], 0.0)
    # conv2 + BN2 + identity shortcut + ReLU (channels padded to Cp everywhere,
    # so this is full-tile and padded rows stay exactly zero).
    out = conv3x3(mid, w2_ref) + b2_ref[...] + x
    out_ref[...] = jnp.maximum(out, 0.0).astype(out_ref.dtype)


def fold_bn(gamma, beta, mean, var, eps=1e-5):
    """Eval-mode BatchNorm as y = scale * x + bias."""
    scale = gamma / jnp.sqrt(var + eps)
    return scale, beta - mean * scale


def prep_conv_weight(w_oihw, scale, cin_pad, cout_pad, per_tap):
    """Fold BN scale into a 3x3 conv weight.  per_tap=True -> (9, cout_pad,
    cin_pad) bf16 (one aligned 2-D slice per tap); else (cout_pad, 9*cin_pad)
    bf16 with tap-major / channel-minor columns matching the patch matrix.
    Padded rows/cols are exactly zero so padded channels stay 0 end-to-end."""
    O, I, KH, KW = w_oihw.shape
    w = w_oihw * scale[:, None, None, None]
    if per_tap:
        w = jnp.transpose(w, (2, 3, 0, 1)).reshape(KH * KW, O, I)
        w = jnp.pad(w, ((0, 0), (0, cout_pad - O), (0, cin_pad - I)))
        return w.astype(jnp.bfloat16)
    w = jnp.transpose(w, (0, 2, 3, 1))                  # (O, ky, kx, I)
    w = jnp.pad(w, ((0, cout_pad - O), (0, 0), (0, 0), (0, cin_pad - I)))
    return w.reshape(cout_pad, KH * KW * cin_pad).astype(jnp.bfloat16)


def prep_bias(bias, c_pad):
    return jnp.pad(bias, (0, c_pad - bias.shape[0])).reshape(c_pad, 1).astype(jnp.float32)


def border_masks(H, W, images_per_block):
    """(16, images_per_block*H*W) bf16 multiplicative masks, one row per tap
    (tap-major; row 4 = centre = all ones).  Precomputed on the host so the
    kernel never evaluates //W and %W over the lanes."""
    idx = jnp.arange(H * W, dtype=jnp.int32)
    yy, xx = idx // W, idx % W
    rows = []
    for ky in range(3):
        for kx in range(3):
            dy, dx = ky - 1, kx - 1
            rows.append((yy + dy >= 0) & (yy + dy < H) & (xx + dx >= 0) & (xx + dx < W))
    m = jnp.stack(rows).astype(jnp.bfloat16)            # (9, H*W)
    m = jnp.tile(m, (1, images_per_block))              # (9, L)
    return jnp.pad(m, ((0, 16 - 9), (0, 0)))            # sublane-pad to 16


def basic_block_forward(x_nchw, w1_oihw, s1, b1, w2_oihw, s2, b2, *,
                        per_tap=None, images_per_block=None):
    """BasicBlock forward (eval-mode BN).  x_nchw: (N, C, H, W) f32."""
    N, Cin, H, W = x_nchw.shape
    Cmid, Cout = w1_oihw.shape[0], w2_oihw.shape[0]
    HW = H * W
    assert Cmid == Cin and Cout == Cin, \
        "identity shortcut requires inplanes == planes (no downsample)"
    assert HW % 128 == 0, "flattened spatial dim must be lane-aligned"

    Cp = ((Cin + 7) // 8) * 8                 # channel pad to the sublane tile
    if per_tap is None:
        per_tap = Cp >= 32                    # tiny Cp: fused K=9*Cp feeds MXU better
    if images_per_block is None:
        # Fold small images onto the lane axis so each grid step is >=~1024
        # lanes wide (amortizes the ~0.35us/step overhead); big maps: 1/step.
        images_per_block = max(1, min(N, 1024 // HW)) if HW < 1024 else 1
    images_per_block = max(1, min(images_per_block, N))
    while N % images_per_block:
        images_per_block -= 1
    NB = images_per_block
    G = N // NB
    L = NB * HW

    w1p = prep_conv_weight(w1_oihw, s1, Cp, Cp, per_tap)
    w2p = prep_conv_weight(w2_oihw, s2, Cp, Cp, per_tap)
    b1p = prep_bias(b1, Cp)
    b2p = prep_bias(b2, Cp)
    mask = border_masks(H, W, NB)             # (16, L) bf16, resident input

    # Channels -> sublanes, images folded contiguously onto the lane axis (the
    # per-image masks also kill cross-image roll leakage).
    x = jnp.transpose(x_nchw.astype(jnp.float32), (1, 0, 2, 3)).reshape(Cin, N * HW)
    x = jnp.pad(x, ((0, Cp - Cin), (0, 0)))

    # Explicit VMEM budget (v7x: 64 MiB/TC physical; default scoped 16-32 MiB).
    blk = 2 * Cp * L * 4 + mask.size * 2 + w1p.size * 2 + w2p.size * 2 + 2 * Cp * 4
    tmp = 2 * Cp * L * 2 + 2 * Cp * L * 4
    if not per_tap:
        tmp += 9 * Cp * L * 6                 # materialized patch matrix (+cast)
    vmem_limit = int(min(max(2 * blk + tmp + (2 << 20), 16 << 20), 64 << 20))

    kernel = functools.partial(basic_block_kernel, W=W, per_tap=per_tap)
    out = pl.pallas_call(
        kernel,
        out_shape=jax.ShapeDtypeStruct((Cp, N * HW), jnp.float32),
        grid_spec=pltpu.PrefetchScalarGridSpec(
            num_scalar_prefetch=0,
            grid=(G,),                                        # batch groups
            in_specs=[
                pl.BlockSpec((Cp, L), lambda g: (0, g)),
                pl.BlockSpec(mask.shape, lambda g: (0, 0)),
                pl.BlockSpec(w1p.shape, lambda g: (0,) * w1p.ndim),
                pl.BlockSpec((Cp, 1), lambda g: (0, 0)),
                pl.BlockSpec(w2p.shape, lambda g: (0,) * w2p.ndim),
                pl.BlockSpec((Cp, 1), lambda g: (0, 0)),
            ],
            out_specs=pl.BlockSpec((Cp, L), lambda g: (0, g)),
        ),
        compiler_params=pltpu.CompilerParams(
            dimension_semantics=("parallel",),                # shards across TCs
            vmem_limit_bytes=vmem_limit),
    )(x, mask, w1p, b1p, w2p, b2p)

    # (Cp, N*HW) -> (N, Cout, H, W); drop padded channels.
    return out.reshape(Cp, N, H, W).transpose(1, 0, 2, 3)[:, :Cout]


def reference_forward(x, w1_oihw, s1, b1, w2_oihw, s2, b2):
    """Pure-JAX BasicBlock reference (eval-mode BN).  Mirrors the kernel's bf16
    quantization points (scale-folded weights and conv inputs) so tolerances
    stay tight; otherwise it is the PyTorch forward:
    relu(bn2(conv2(relu(bn1(conv1(x))))) + x)."""
    f32 = jnp.float32
    dn = ("NCHW", "OIHW", "NCHW")
    w1q = (w1_oihw * s1[:, None, None, None]).astype(jnp.bfloat16).astype(f32)
    w2q = (w2_oihw * s2[:, None, None, None]).astype(jnp.bfloat16).astype(f32)
    xq = x.astype(jnp.bfloat16).astype(f32)
    mid = lax.conv_general_dilated(xq, w1q, (1, 1), "SAME", dimension_numbers=dn,
                                   precision=lax.Precision.HIGHEST)
    mid = jnp.maximum(mid + b1[None, :, None, None], 0.0)
    mid = mid.astype(jnp.bfloat16).astype(f32)
    out = lax.conv_general_dilated(mid, w2q, (1, 1), "SAME", dimension_numbers=dn,
                                   precision=lax.Precision.HIGHEST)
    out = out + b2[None, :, None, None] + x              # identity shortcut (f32)
    return jnp.maximum(out, 0.0)


if __name__ == "__main__":
    # BasicBlock(inplanes=4, planes=4, stride=1, downsample=None), eval mode.
    N, Cin, H, W = 2, 4, 16, 16
    Cmid = Cout = 4

    key = jax.random.PRNGKey(0)
    keys = jax.random.split(key, 11)

    w1 = 0.2 * jax.random.normal(keys[0], (Cmid, Cin, 3, 3), jnp.float32)
    w2 = 0.2 * jax.random.normal(keys[1], (Cout, Cmid, 3, 3), jnp.float32)

    gamma1 = 1.0 + 0.1 * jax.random.normal(keys[2], (Cmid,), jnp.float32)
    beta1 = 0.1 * jax.random.normal(keys[3], (Cmid,), jnp.float32)
    mean1 = 0.1 * jax.random.normal(keys[4], (Cmid,), jnp.float32)
    var1 = jnp.abs(jax.random.normal(keys[5], (Cmid,), jnp.float32)) + 0.5
    gamma2 = 1.0 + 0.1 * jax.random.normal(keys[6], (Cout,), jnp.float32)
    beta2 = 0.1 * jax.random.normal(keys[7], (Cout,), jnp.float32)
    mean2 = 0.1 * jax.random.normal(keys[8], (Cout,), jnp.float32)
    var2 = jnp.abs(jax.random.normal(keys[9], (Cout,), jnp.float32)) + 0.5

    s1, b1 = fold_bn(gamma1, beta1, mean1, var1)
    s2, b2 = fold_bn(gamma2, beta2, mean2, var2)

    x = jax.random.normal(keys[10], (N, Cin, H, W), jnp.float32)

    ref = reference_forward(x, w1, s1, b1, w2, s2, b2)

    fwd = jax.jit(basic_block_forward,
                  static_argnames=("per_tap", "images_per_block"))
    # Exercise both conv structures: fused K=9*Cp (default at tiny Cp) and the
    # per-tap accumulated-matmul path used at real channel counts.
    for per_tap in (False, True):
        out = jax.block_until_ready(fwd(x, w1, s1, b1, w2, s2, b2, per_tap=per_tap))
        assert out.shape == (N, Cout, H, W)
        err = float(jnp.max(jnp.abs(out - ref)))
        assert jnp.allclose(out, ref, atol=1e-2, rtol=1e-2), \
            f"per_tap={per_tap}: max abs err = {err}"

    print("KERNEL_OK")
</pallas_src>

<mosaic_0001>
module attributes {stable_mosaic.version = 11 : i64} {
  func.func @basic_block_kernel(%arg0: i32, %arg1: memref<8x512xf32, #tpu.memory_space<vmem>>, %arg2: memref<16x512xbf16, #tpu.memory_space<vmem>>, %arg3: memref<8x72xbf16, #tpu.memory_space<vmem>>, %arg4: memref<8x1xf32, #tpu.memory_space<vmem>>, %arg5: memref<8x72xbf16, #tpu.memory_space<vmem>>, %arg6: memref<8x1xf32, #tpu.memory_space<vmem>>, %arg7: memref<8x512xf32, #tpu.memory_space<vmem>>) attributes {dimension_semantics = [#tpu.dimension_semantics<parallel>], iteration_bounds = array<i64: 1>, scalar_prefetch = 0 : i64, scratch_operands = 0 : i64, tpu.core_type = #tpu.core_type<tc>, window_params = [{transform_indices = @transform_0, window_bounds = array<i64: 8, 512>}, {pipeline_mode = #tpu.pipeline_mode<synchronous>, transform_indices = @transform_1, window_bounds = array<i64: 16, 512>}, {pipeline_mode = #tpu.pipeline_mode<synchronous>, transform_indices = @transform_2, window_bounds = array<i64: 8, 72>}, {pipeline_mode = #tpu.pipeline_mode<synchronous>, transform_indices = @transform_3, window_bounds = array<i64: 8, 1>}, {pipeline_mode = #tpu.pipeline_mode<synchronous>, transform_indices = @transform_4, window_bounds = array<i64: 8, 72>}, {pipeline_mode = #tpu.pipeline_mode<synchronous>, transform_indices = @transform_5, window_bounds = array<i64: 8, 1>}, {transform_indices = @transform_6, window_bounds = array<i64: 8, 512>}]} {
    %c0 = arith.constant 0 : index
    %c0_0 = arith.constant 0 : index
    %0 = vector.load %arg1[%c0, %c0_0] : memref<8x512xf32, #tpu.memory_space<vmem>>, vector<8x512xf32>
    %c0_1 = arith.constant 0 : index
    %c0_2 = arith.constant 0 : index
    %1 = vector.load %arg2[%c0_1, %c0_2] : memref<16x512xbf16, #tpu.memory_space<vmem>>, vector<16x512xbf16>
    %c17_i32 = arith.constant 17 : i32
    %2 = tpu.dynamic_rotate %0 by %c17_i32 dim 1 : vector<8x512xf32>, i32 -> vector<8x512xf32>
    %3 = vector.extract_strided_slice %1 {offsets = [0, 0], sizes = [1, 512], strides = [1, 1]} : vector<16x512xbf16> to vector<1x512xbf16>
    %4 = arith.extf %3 : vector<1x512xbf16> to vector<1x512xf32>
    %5 = vector.broadcast %4 : vector<1x512xf32> to vector<8x512xf32>
    %6 = arith.mulf %2, %5 : vector<8x512xf32>
    %c16_i32 = arith.constant 16 : i32
    %7 = tpu.dynamic_rotate %0 by %c16_i32 dim 1 : vector<8x512xf32>, i32 -> vector<8x512xf32>
    %8 = vector.extract_strided_slice %1 {offsets = [1, 0], sizes = [1, 512], strides = [1, 1]} : vector<16x512xbf16> to vector<1x512xbf16>
    %9 = arith.extf %8 : vector<1x512xbf16> to vector<1x512xf32>
    %10 = vector.broadcast %9 : vector<1x512xf32> to vector<8x512xf32>
    %11 = arith.mulf %7, %10 : vector<8x512xf32>
    %c15_i32 = arith.constant 15 : i32
    %12 = tpu.dynamic_rotate %0 by %c15_i32 dim 1 : vector<8x512xf32>, i32 -> vector<8x512xf32>
    %13 = vector.extract_strided_slice %1 {offsets = [2, 0], sizes = [1, 512], strides = [1, 1]} : vector<16x512xbf16> to vector<1x512xbf16>
    %14 = arith.extf %13 : vector<1x512xbf16> to vector<1x512xf32>
    %15 = vector.broadcast %14 : vector<1x512xf32> to vector<8x512xf32>
    %16 = arith.mulf %12, %15 : vector<8x512xf32>
    %c1_i32 = arith.constant 1 : i32
    %17 = tpu.dynamic_rotate %0 by %c1_i32 dim 1 : vector<8x512xf32>, i32 -> vector<8x512xf32>
    %18 = vector.extract_strided_slice %1 {offsets = [3, 0], sizes = [1, 512], strides = [1, 1]} : vector<16x512xbf16> to vector<1x512xbf16>
    %19 = arith.extf %18 : vector<1x512xbf16> to vector<1x512xf32>
    %20 = vector.broadcast %19 : vector<1x512xf32> to vector<8x512xf32>
    %21 = arith.mulf %17, %20 : vector<8x512xf32>
    %c511_i32 = arith.constant 511 : i32
    %22 = tpu.dynamic_rotate %0 by %c511_i32 dim 1 : vector<8x512xf32>, i32 -> vector<8x512xf32>
    %23 = vector.extract_strided_slice %1 {offsets = [5, 0], sizes = [1, 512], strides = [1, 1]} : vector<16x512xbf16> to vector<1x512xbf16>
    %24 = arith.extf %23 : vector<1x512xbf16> to vector<1x512xf32>
    %25 = vector.broadcast %24 : vector<1x512xf32> to vector<8x512xf32>
    %26 = arith.mulf %22, %25 : vector<8x512xf32>
    %c497_i32 = arith.constant 497 : i32
    %27 = tpu.dynamic_rotate %0 by %c497_i32 dim 1 : vector<8x512xf32>, i32 -> vector<8x512xf32>
    %28 = vector.extract_strided_slice %1 {offsets = [6, 0], sizes = [1, 512], strides = [1, 1]} : vector<16x512xbf16> to vector<1x512xbf16>
    %29 = arith.extf %28 : vector<1x512xbf16> to vector<1x512xf32>
    %30 = vector.broadcast %29 : vector<1x512xf32> to vector<8x512xf32>
    %31 = arith.mulf %27, %30 : vector<8x512xf32>
    %c496_i32 = arith.constant 496 : i32
    %32 = tpu.dynamic_rotate %0 by %c496_i32 dim 1 : vector<8x512xf32>, i32 -> vector<8x512xf32>
    %33 = vector.extract_strided_slice %1 {offsets = [7, 0], sizes = [1, 512], strides = [1, 1]} : vector<16x512xbf16> to vector<1x512xbf16>
    %34 = arith.extf %33 : vector<1x512xbf16> to vector<1x512xf32>
    %35 = vector.broadcast %34 : vector<1x512xf32> to vector<8x512xf32>
    %36 = arith.mulf %32, %35 : vector<8x512xf32>
    %c495_i32 = arith.constant 495 : i32
    %37 = tpu.dynamic_rotate %0 by %c495_i32 dim 1 : vector<8x512xf32>, i32 -> vector<8x512xf32>
    %38 = vector.extract_strided_slice %1 {offsets = [8, 0], sizes = [1, 512], strides = [1, 1]} : vector<16x512xbf16> to vector<1x512xbf16>
    %39 = arith.extf %38 : vector<1x512xbf16> to vector<1x512xf32>
    %40 = vector.broadcast %39 : vector<1x512xf32> to vector<8x512xf32>
    %41 = arith.mulf %37, %40 : vector<8x512xf32>
    %42 = tpu.concatenate %6, %11, %16, %21, %0, %26, %31, %36, %41 in 0 : vector<8x512xf32>, vector<8x512xf32>, vector<8x512xf32>, vector<8x512xf32>, vector<8x512xf32>, vector<8x512xf32>, vector<8x512xf32>, vector<8x512xf32>, vector<8x512xf32> -> vector<72x512xf32>
    %c0_3 = arith.constant 0 : index
    %c0_4 = arith.constant 0 : index
    %43 = vector.load %arg3[%c0_3, %c0_4] : memref<8x72xbf16, #tpu.memory_space<vmem>>, vector<8x72xbf16>
    %44 = arith.truncf %42 : vector<72x512xf32> to vector<72x512xbf16>
    %cst = arith.constant dense<0.000000e+00> : vector<8x512xf32>
    %45 = tpu.matmul %43, %44, %cst {dimension_numbers = #tpu.dot_dimension_numbers<[1], [0], [0], [1], [0, 0, 1, 1], [], []>} : vector<8x72xbf16>, vector<72x512xbf16>, vector<8x512xf32> -> vector<8x512xf32>
    %c0_5 = arith.constant 0 : index
    %c0_6 = arith.constant 0 : index
    %46 = vector.load %arg4[%c0_5, %c0_6] : memref<8x1xf32, #tpu.memory_space<vmem>>, vector<8x1xf32>
    %47 = vector.broadcast %46 : vector<8x1xf32> to vector<8x512xf32>
    %48 = arith.addf %45, %47 : vector<8x512xf32>
    %cst_7 = arith.constant 0.000000e+00 : f32
    %49 = vector.broadcast %cst_7 : f32 to vector<8x512xf32>
    %50 = arith.maximumf %48, %49 : vector<8x512xf32>
    %c17_i32_8 = arith.constant 17 : i32
    %51 = tpu.dynamic_rotate %50 by %c17_i32_8 dim 1 : vector<8x512xf32>, i32 -> vector<8x512xf32>
    %52 = vector.extract_strided_slice %1 {offsets = [0, 0], sizes = [1, 512], strides = [1, 1]} : vector<16x512xbf16> to vector<1x512xbf16>
    %53 = arith.extf %52 : vector<1x512xbf16> to vector<1x512xf32>
    %54 = vector.broadcast %53 : vector<1x512xf32> to vector<8x512xf32>
    %55 = arith.mulf %51, %54 : vector<8x512xf32>
    %c16_i32_9 = arith.constant 16 : i32
    %56 = tpu.dynamic_rotate %50 by %c16_i32_9 dim 1 : vector<8x512xf32>, i32 -> vector<8x512xf32>
    %57 = vector.extract_strided_slice %1 {offsets = [1, 0], sizes = [1, 512], strides = [1, 1]} : vector<16x512xbf16> to vector<1x512xbf16>
    %58 = arith.extf %57 : vector<1x512xbf16> to vector<1x512xf32>
    %59 = vector.broadcast %58 : vector<1x512xf32> to vector<8x512xf32>
    %60 = arith.mulf %56, %59 : vector<8x512xf32>
    %c15_i32_10 = arith.constant 15 : i32
    %61 = tpu.dynamic_rotate %50 by %c15_i32_10 dim 1 : vector<8x512xf32>, i32 -> vector<8x512xf32>
    %62 = vector.extract_strided_slice %1 {offsets = [2, 0], sizes = [1, 512], strides = [1, 1]} : vector<16x512xbf16> to vector<1x512xbf16>
    %63 = arith.extf %62 : vector<1x512xbf16> to vector<1x512xf32>
    %64 = vector.broadcast %63 : vector<1x512xf32> to vector<8x512xf32>
    %65 = arith.mulf %61, %64 : vector<8x512xf32>
    %c1_i32_11 = arith.constant 1 : i32
    %66 = tpu.dynamic_rotate %50 by %c1_i32_11 dim 1 : vector<8x512xf32>, i32 -> vector<8x512xf32>
    %67 = vector.extract_strided_slice %1 {offsets = [3, 0], sizes = [1, 512], strides = [1, 1]} : vector<16x512xbf16> to vector<1x512xbf16>
    %68 = arith.extf %67 : vector<1x512xbf16> to vector<1x512xf32>
    %69 = vector.broadcast %68 : vector<1x512xf32> to vector<8x512xf32>
    %70 = arith.mulf %66, %69 : vector<8x512xf32>
    %c511_i32_12 = arith.constant 511 : i32
    %71 = tpu.dynamic_rotate %50 by %c511_i32_12 dim 1 : vector<8x512xf32>, i32 -> vector<8x512xf32>
    %72 = vector.extract_strided_slice %1 {offsets = [5, 0], sizes = [1, 512], strides = [1, 1]} : vector<16x512xbf16> to vector<1x512xbf16>
    %73 = arith.extf %72 : vector<1x512xbf16> to vector<1x512xf32>
    %74 = vector.broadcast %73 : vector<1x512xf32> to vector<8x512xf32>
    %75 = arith.mulf %71, %74 : vector<8x512xf32>
    %c497_i32_13 = arith.constant 497 : i32
    %76 = tpu.dynamic_rotate %50 by %c497_i32_13 dim 1 : vector<8x512xf32>, i32 -> vector<8x512xf32>
    %77 = vector.extract_strided_slice %1 {offsets = [6, 0], sizes = [1, 512], strides = [1, 1]} : vector<16x512xbf16> to vector<1x512xbf16>
    %78 = arith.extf %77 : vector<1x512xbf16> to vector<1x512xf32>
    %79 = vector.broadcast %78 : vector<1x512xf32> to vector<8x512xf32>
    %80 = arith.mulf %76, %79 : vector<8x512xf32>
    %c496_i32_14 = arith.constant 496 : i32
    %81 = tpu.dynamic_rotate %50 by %c496_i32_14 dim 1 : vector<8x512xf32>, i32 -> vector<8x512xf32>
    %82 = vector.extract_strided_slice %1 {offsets = [7, 0], sizes = [1, 512], strides = [1, 1]} : vector<16x512xbf16> to vector<1x512xbf16>
    %83 = arith.extf %82 : vector<1x512xbf16> to vector<1x512xf32>
    %84 = vector.broadcast %83 : vector<1x512xf32> to vector<8x512xf32>
    %85 = arith.mulf %81, %84 : vector<8x512xf32>
    %c495_i32_15 = arith.constant 495 : i32
    %86 = tpu.dynamic_rotate %50 by %c495_i32_15 dim 1 : vector<8x512xf32>, i32 -> vector<8x512xf32>
    %87 = vector.extract_strided_slice %1 {offsets = [8, 0], sizes = [1, 512], strides = [1, 1]} : vector<16x512xbf16> to vector<1x512xbf16>
    %88 = arith.extf %87 : vector<1x512xbf16> to vector<1x512xf32>
    %89 = vector.broadcast %88 : vector<1x512xf32> to vector<8x512xf32>
    %90 = arith.mulf %86, %89 : vector<8x512xf32>
    %91 = tpu.concatenate %55, %60, %65, %70, %50, %75, %80, %85, %90 in 0 : vector<8x512xf32>, vector<8x512xf32>, vector<8x512xf32>, vector<8x512xf32>, vector<8x512xf32>, vector<8x512xf32>, vector<8x512xf32>, vector<8x512xf32>, vector<8x512xf32> -> vector<72x512xf32>
    %c0_16 = arith.constant 0 : index
    %c0_17 = arith.constant 0 : index
    %92 = vector.load %arg5[%c0_16, %c0_17] : memref<8x72xbf16, #tpu.memory_space<vmem>>, vector<8x72xbf16>
    %93 = arith.truncf %91 : vector<72x512xf32> to vector<72x512xbf16>
    %cst_18 = arith.constant dense<0.000000e+00> : vector<8x512xf32>
    %94 = tpu.matmul %92, %93, %cst_18 {dimension_numbers = #tpu.dot_dimension_numbers<[1], [0], [0], [1], [0, 0, 1, 1], [], []>} : vector<8x72xbf16>, vector<72x512xbf16>, vector<8x512xf32> -> vector<8x512xf32>
    %c0_19 = arith.constant 0 : index
    %c0_20 = arith.constant 0 : index
    %95 = vector.load %arg6[%c0_19, %c0_20] : memref<8x1xf32, #tpu.memory_space<vmem>>, vector<8x1xf32>
    %96 = vector.broadcast %95 : vector<8x1xf32> to vector<8x512xf32>
    %97 = arith.addf %94, %96 : vector<8x512xf32>
    %98 = arith.addf %97, %0 : vector<8x512xf32>
    %cst_21 = arith.constant 0.000000e+00 : f32
    %99 = vector.broadcast %cst_21 : f32 to vector<8x512xf32>
    %100 = arith.maximumf %98, %99 : vector<8x512xf32>
    %c0_22 = arith.constant 0 : index
    %c0_23 = arith.constant 0 : index
    %101 = vector.load %arg7[%c0_22, %c0_23] : memref<8x512xf32, #tpu.memory_space<vmem>>, vector<8x512xf32>
    tpu.vector_store %arg7[%c0_22, %c0_23], %100 {strides = array<i32>} : memref<8x512xf32, #tpu.memory_space<vmem>>, vector<8x512xf32>,
    return
  }
  func.func @transform_0(%arg0: i32) -> (i32, i32) {
    %c0_i32 = arith.constant 0 : i32
    %c0_i32_0 = arith.constant 0 : i32
    return %c0_i32, %arg0 : i32, i32
  }
  func.func @transform_1(%arg0: i32) -> (i32, i32) {
    %c0_i32 = arith.constant 0 : i32
    %c0_i32_0 = arith.constant 0 : i32
    %c0_i32_1 = arith.constant 0 : i32
    return %c0_i32, %c0_i32_0 : i32, i32
  }
  func.func @transform_2(%arg0: i32) -> (i32, i32) {
    %c0_i32 = arith.constant 0 : i32
    %c0_i32_0 = arith.constant 0 : i32
    %c0_i32_1 = arith.constant 0 : i32
    return %c0_i32, %c0_i32_0 : i32, i32
  }
  func.func @transform_3(%arg0: i32) -> (i32, i32) {
    %c0_i32 = arith.constant 0 : i32
    %c0_i32_0 = arith.constant 0 : i32
    %c0_i32_1 = arith.constant 0 : i32
    return %c0_i32, %c0_i32_0 : i32, i32
  }
  func.func @transform_4(%arg0: i32) -> (i32, i32) {
    %c0_i32 = arith.constant 0 : i32
    %c0_i32_0 = arith.constant 0 : i32
    %c0_i32_1 = arith.constant 0 : i32
    return %c0_i32, %c0_i32_0 : i32, i32
  }
  func.func @transform_5(%arg0: i32) -> (i32, i32) {
    %c0_i32 = arith.constant 0 : i32
    %c0_i32_0 = arith.constant 0 : i32
    %c0_i32_1 = arith.constant 0 : i32
    return %c0_i32, %c0_i32_0 : i32, i32
  }
  func.func @transform_6(%arg0: i32) -> (i32, i32) {
    %c0_i32 = arith.constant 0 : i32
    %c0_i32_0 = arith.constant 0 : i32
    return %c0_i32, %arg0 : i32, i32
  }
}

</mosaic_0001>

<bundles_post_ra>
// kernel: basic_block_forward.1
= control target key start
LH: loop header
LB: loop body
LE: loop exit
PB: predicated region body
PF: predicated region fallthrough
CT: control target
= control target key end

     0   :  { %s722_s25 = smov 111   ;;  %s723_s30 = smov 113   ;;  %v729_v4 = vmov 0   ;;  %v40_v6 = vlaneseq  ;;  %vm337_vm1 = vcmask 1043456   ;;  %vm333_vm9 = vcmask 588800   ;;  %s1308_s0 = inlined_call_operand.vmem [shape: f32[8,512], index: 0, kind: input, shape index: {}]   ;;  %s1309_s3 = inlined_call_operand.vmem [shape: f32[8,1], index: 3, kind: input, shape index: {}]   ;;  %s1310_s1 = inlined_call_operand.vmem [shape: bf16[16,512], index: 1, kind: input, shape index: {}]   ;;  %s1311_s2 = inlined_call_operand.vmem [shape: bf16[8,72], index: 2, kind: input, shape index: {}]   ;;  %s1312_s5 = inlined_call_operand.vmem [shape: f32[8,1], index: 5, kind: input, shape index: {}]   ;;  %s1313_s4 = inlined_call_operand.vmem [shape: bf16[8,72], index: 4, kind: input, shape index: {}]   ;;  %s1314_s6 = inlined_call_operand.vmem [shape: f32[8,512], index: 6, kind: output, shape index: {}]  }
   0x1   :  { %v769_v0 = vld [vmem:[%s1308_s0 + $0x10] sm:$0xff]  ;;  %v774_v1 = vld [vmem:[%s1308_s0] sm:$0xff]  ;;  %v783_v2 = vld [vmem:[%s1308_s0 + $0x18] sm:$0xff]  ;;  %s725_s7 = smov 127   ;;  %s726_s8 = smov 15   ;;  %382 = vmatprep.mubr.bf16.mxu0 %v729_v4  ;;  %423 = vmatprep.mubr.bf16.mxu1 %v729_v4 }
   0x2   :  { %273 = vrot.lane.b32.xlu1 %v769_v0, %s722_s25  ;;  %269 = vrot.lane.b32.xlu0 %v774_v1, %s722_s25  ;;  %v788_v3 = vld [vmem:[%s1308_s0 + $0x8] sm:$0xff]  ;;  %s724_s0 = smov 112   ;;  %s727_s9 = smov 1   ;;  %v327_v5 = vld [vmem:[%s1309_s3] sm:$0xff]  ;;  %v856_v7 = vshrl.u32 %v40_v6, 7  ;;  %v864_v10 = vand.u32 127, %v40_v6 }
   0x3   :  { %s728_s10 = smov 17   ;;  %721 = vset.pattern.permute.xlu0 %v729_v4  ;;  %s730_s11 = smov 16   ;;  %v31_v8 = vld [vmem:[%s1310_s1 + $0x18] sm:$0xff]  ;;  %v30_v9 = vld [vmem:[%s1310_s1 + $0x10] sm:$0xff]  ;;  %v29_v38 = vld [vmem:[%s1310_s1 + $0x8] sm:$0xff] }
   0x4   :  { %v867_v11 = vsub.s32 0, %v856_v7  ;;  %v284_v12 = vunpack.c.l.bf16 %v31_v8  ;;  %v282_v13 = vunpack.c.l.bf16 %v30_v9  ;;  %v283_v14 = vunpack.c.h.bf16 %v30_v9  ;;  %v28_v41 = vld [vmem:[%s1310_s1] sm:$0xff] }
   0x5   :  { %v285_v15 = vunpack.c.h.bf16 %v31_v8  ;;  %vm277_vm0 = vcmp.lt.s32.totalorder %v864_v10, 111  ;;  %v904_v42 = vunpack.c.h.bf16 %v28_v41  ;;  %v906_v43 = vunpack.c.h.bf16 %v29_v38 }
   0x6   :  { %275 = vrot.lane.b32.xlu1 %v783_v2, %s722_s25  ;;  %271 = vrot.lane.b32.xlu0 %v788_v3, %s722_s25  ;;  %v871_v18 = vrot.slane %v284_v12, %v867_v11  ;;  %v874_v19 = vrot.slane %v282_v13, %v867_v11  ;;  %v877_v20 = vrot.slane %v283_v14, %v867_v11  ;;  %v908_v46 = vunpack.c.l.bf16 %v29_v38 }
   0x7   :  { %v880_v21 = vrot.slane %v285_v15, %v867_v11  ;;  %v251_v47 = vsub.s32 7, %v856_v7  ;;  %v218_v48 = vsub.s32 6, %v856_v7  ;;  %v912_v49 = vunpack.c.l.bf16 %v28_v41 }
   0x8   :  { %vm244_vm2 = vcmp.lt.s32.totalorder %v864_v10, 112  ;;  %vm211_vm3 = vcmp.lt.s32.totalorder %v864_v10, 113  ;;  %v185_v13 = vsub.s32 5, %v856_v7  ;;  %vm178_vm4 = vcmp.lt.s32.totalorder %v864_v10, 127 }
   0x9   :  { %v917_v50 = vrot.slane %v906_v43, %v218_v48  ;;  %v920_v51 = vrot.slane %v904_v42, %v218_v48  ;;  %v925_v55 = vrot.slane %v908_v46, %v218_v48  ;;  %v930_v57 = vrot.slane %v912_v49, %v251_v47 }
   0xa   :  { %205 = vrot.lane.b32.xlu1 %v788_v3, %s723_s30  ;;  %203 = vrot.lane.b32.xlu0 %v774_v1, %s723_s30  ;;  %v935_v59 = vrot.slane %v906_v43, %v251_v47  ;;  %v938_v60 = vrot.slane %v904_v42, %v251_v47  ;;  %v941_v61 = vrot.slane %v908_v46, %v251_v47  ;;  %vm112_vm5 = vcmp.lt.s32.totalorder %v864_v10, 15 }
   0xb   :  { %v944_v62 = vrot.slane %v912_v49, %v218_v48  ;;  %vm145_vm6 = vcmp.lt.s32.totalorder %v864_v10, 1  ;;  %vm42_vm7 = vcmp.lt.s32.totalorder %v864_v10, 17  ;;  %vm79_vm8 = vcmp.lt.s32.totalorder %v864_v10, 16  ;;  %v564_v10 = vld [vmem:[%s1313_s4] sm:$0xf] }
   0xe   :  { %209 = vrot.lane.b32.xlu1 %v783_v2, %s723_s30  ;;  %207 = vrot.lane.b32.xlu0 %v769_v0, %s723_s30 }
  0x12   :  { %238 = vrot.lane.b32.xlu1 %v788_v3, %s724_s0  ;;  %236 = vrot.lane.b32.xlu0 %v774_v1, %s724_s0 }
  0x16   :  { %242 = vrot.lane.b32.xlu1 %v783_v2, %s724_s0  ;;  %240 = vrot.lane.b32.xlu0 %v769_v0, %s724_s0 }
  0x1a   :  { %172 = vrot.lane.b32.xlu1 %v788_v3, %s725_s7  ;;  %170 = vrot.lane.b32.xlu0 %v774_v1, %s725_s7 }
  0x1e   :  { %176 = vrot.lane.b32.xlu1 %v783_v2, %s725_s7  ;;  %174 = vrot.lane.b32.xlu0 %v769_v0, %s725_s7 }
  0x22   :  { %106 = vrot.lane.b32.xlu1 %v788_v3, %s726_s8  ;;  %104 = vrot.lane.b32.xlu0 %v774_v1, %s726_s8 }
  0x26   :  { %110 = vrot.lane.b32.xlu1 %v783_v2, %s726_s8  ;;  %108 = vrot.lane.b32.xlu0 %v769_v0, %s726_s8 }
  0x2a   :  { %139 = vrot.lane.b32.xlu1 %v788_v3, %s727_s9  ;;  %137 = vrot.lane.b32.xlu0 %v774_v1, %s727_s9 }
  0x2e   :  { %143 = vrot.lane.b32.xlu1 %v783_v2, %s727_s9  ;;  %141 = vrot.lane.b32.xlu0 %v769_v0, %s727_s9 }
  0x32   :  { %34 = vrot.lane.b32.xlu1 %v788_v3, %s728_s10  ;;  %32 = vrot.lane.b32.xlu0 %v774_v1, %s728_s10 }
  0x36   :  { %38 = vrot.lane.b32.xlu1 %v783_v2, %s728_s10  ;;  %36 = vrot.lane.b32.xlu0 %v769_v0, %s728_s10 }
  0x3a   :  { %73 = vrot.lane.b32.xlu1 %v788_v3, %s730_s11  ;;  %71 = vrot.lane.b32.xlu0 %v774_v1, %s730_s11 }
  0x3e   :  { %77 = vrot.lane.b32.xlu1 %v783_v2, %s730_s11  ;;  %75 = vrot.lane.b32.xlu0 %v769_v0, %s730_s11 }
  0x42   :  { %330 = vperm.xlu0 %721, %v327_v5  }
  0x74   :  { %v274_v16 = vpop.permute.xlu1 %273  ;;  %v270_v17 = vpop.permute.xlu0 %269 }
  0x78   :  { %v276_v22 = vpop.permute.xlu1 %275  ;;  %v272_v23 = vpop.permute.xlu0 %271 }
  0x79   :  { %v278_v24 = vsel %vm277_vm0, %v274_v16, %v276_v22  ;;  %v281_v25 = vsel %vm277_vm0, %v276_v22, %v270_v17  ;;  %v279_v26 = vsel %vm277_vm0, %v272_v23, %v274_v16  ;;  %v280_v27 = vsel %vm277_vm0, %v270_v17, %v272_v23 }
  0x7a   :  { %v304_v28 = vmul.f32 %v871_v18, %v278_v24  ;;  %v302_v29 = vmul.f32 %v874_v19, %v280_v27  ;;  %v303_v30 = vmul.f32 %v877_v20, %v279_v26  ;;  %v305_v31 = vmul.f32 %v880_v21, %v281_v25 }
  0x7c   :  { %v206_v32 = vpop.permute.xlu1 %205  ;;  %v204_v33 = vpop.permute.xlu0 %203  ;;  %v324_v34 = vpack.c.bf16 %v303_v30, %v303_v30  ;;  %v326_v35 = vpack.c.bf16 %v305_v31, %v305_v31  ;;  %v323_v36 = vpack.c.bf16 %v302_v29, %v302_v29  ;;  %v325_v37 = vpack.c.bf16 %v304_v28, %v304_v28 }
  0x7d   :  { %v214_v5 = vsel %vm211_vm3, %v204_v33, %v206_v32 }
  0x7e   :  { %704 = vmatprep.subr.msk.bf16.mxu0 %vm337_vm1, %v324_v34  ;;  %706 = vmatprep.subr.msk.bf16.mxu1 %vm337_vm1, %v326_v35  ;;  %v339_v39 = vsel %vm337_vm1, %v323_v36, 0  ;;  %v345_v40 = vsel %vm337_vm1, %v325_v37, 0  ;;  %v232_v26 = vmul.f32 %v944_v62, %v214_v5  ;;  %v970_v34 = vrot.slane %v906_v43, %v185_v13 }
  0x7f   :  { %357 = vmatpush1.bf16.msra.mxu0 %v339_v39  ;;  %398 = vmatpush1.bf16.msra.mxu1 %v345_v40  ;;  %v975_v36 = vrot.slane %v904_v42, %v185_v13  ;;  %v978_v37 = vrot.slane %v908_v46, %v185_v13 }
  0x80   :  { %v210_v44 = vpop.permute.xlu1 %209  ;;  %v208_v45 = vpop.permute.xlu0 %207 }
  0x81   :  { %v215_v54 = vsel %vm211_vm3, %v210_v44, %v204_v33  ;;  %v213_v56 = vsel %vm211_vm3, %v206_v32, %v208_v45  ;;  %v212_v63 = vsel %vm211_vm3, %v208_v45, %v210_v44  ;;  %v967_v32 = vrot.slane %v912_v49, %v185_v13 }
  0x82   :  { %v235_v6 = vmul.f32 %v917_v50, %v215_v54  ;;  %v233_v8 = vmul.f32 %v920_v51, %v213_v56  ;;  %v234_v22 = vmul.f32 %v925_v55, %v212_v63 }
  0x84   :  { %v239_v52 = vpop.permute.xlu1 %238  ;;  %v237_v53 = vpop.permute.xlu0 %236 }
  0x85   :  { %v247_v58 = vsel %vm244_vm2, %v237_v53, %v239_v52 }
  0x86   :  { %v265_v14 = vmul.f32 %v930_v57, %v247_v58 }
  0x88   :  { %v243_v9 = vpop.permute.xlu1 %242  ;;  %v241_v12 = vpop.permute.xlu0 %240  ;;  %v319_v33 = vpack.c.bf16 %v265_v14, %v232_v26 }
  0x89   :  { %v248_v15 = vsel %vm244_vm2, %v243_v9, %v237_v53  ;;  %v245_v16 = vsel %vm244_vm2, %v241_v12, %v243_v9  ;;  %v246_v17 = vsel %vm244_vm2, %v239_v52, %v241_v12 }
  0x8a   :  { %v268_v23 = vmul.f32 %v935_v59, %v248_v15  ;;  %v266_v24 = vmul.f32 %v938_v60, %v246_v17  ;;  %v267_v25 = vmul.f32 %v941_v61, %v245_v16 }
  0x8c   :  { %v173_v27 = vpop.permute.xlu1 %172  ;;  %v171_v28 = vpop.permute.xlu0 %170  ;;  %v320_v29 = vpack.c.bf16 %v266_v24, %v233_v8  ;;  %v322_v30 = vpack.c.bf16 %v268_v23, %v235_v6  ;;  %v321_v31 = vpack.c.bf16 %v267_v25, %v234_v22  ;;  %v119_v6 = vsub.s32 2, %v856_v7 }
  0x8d   :  { %v181_v35 = vsel %vm178_vm4, %v171_v28, %v173_v27  ;;  %v152_v8 = vsub.s32 3, %v856_v7 }
  0x8e   :  { %358 = vmatprep.subr.bf16.mxu0 %v320_v29  ;;  %399 = vmatprep.subr.bf16.mxu1 %v322_v30  ;;  %v199_v40 = vmul.f32 %v967_v32, %v181_v35  ;;  %v998_v13 = vrot.slane %v904_v42, %v119_v6  ;;  %v1007_v16 = vrot.slane %v912_v49, %v119_v6 }
  0x8f   :  { %359 = vmatpush1.bf16.msra.mxu0 %v319_v33  ;;  %400 = vmatpush1.bf16.msra.mxu1 %v321_v31  ;;  %v1002_v14 = vrot.slane %v904_v42, %v152_v8  ;;  %v1010_v17 = vrot.slane %v908_v46, %v119_v6  ;;  %v1013_v22 = vrot.slane %v906_v43, %v119_v6 }
  0x90   :  { %v177_v38 = vpop.permute.xlu1 %176  ;;  %v175_v39 = vpop.permute.xlu0 %174  ;;  %v315_v5 = vpack.c.bf16 %v199_v40, %v774_v1  ;;  %v1030_v33 = vrot.slane %v906_v43, %v152_v8 }
  0x91   :  { %v182_v41 = vsel %vm178_vm4, %v177_v38, %v171_v28  ;;  %v179_v44 = vsel %vm178_vm4, %v175_v39, %v177_v38  ;;  %v180_v45 = vsel %vm178_vm4, %v173_v27, %v175_v39  ;;  %v1020_v27 = vrot.slane %v912_v49, %v152_v8 }
  0x92   :  { %v202_v47 = vmul.f32 %v970_v34, %v182_v41  ;;  %v200_v48 = vmul.f32 %v975_v36, %v180_v45  ;;  %v201_v52 = vmul.f32 %v978_v37, %v179_v44  ;;  %v1023_v28 = vrot.slane %v908_v46, %v152_v8 }
  0x94   :  { %v107_v53 = vpop.permute.xlu1 %106  ;;  %v105_v54 = vpop.permute.xlu0 %104  ;;  %v316_v56 = vpack.c.bf16 %v200_v48, %v788_v3  ;;  %v318_v58 = vpack.c.bf16 %v202_v47, %v783_v2  ;;  %v317_v63 = vpack.c.bf16 %v201_v52, %v769_v0 }
  0x95   :  { %v115_v15 = vsel %vm112_vm5, %v105_v54, %v107_v53 }
  0x96   :  { %360 = vmatprep.subr.bf16.mxu0 %v316_v56  ;;  %401 = vmatprep.subr.bf16.mxu1 %v318_v58  ;;  %v134_v29 = vmul.f32 %v998_v13, %v115_v15 }
  0x97   :  { %361 = vmatpush1.bf16.msra.mxu0 %v315_v5  ;;  %402 = vmatpush1.bf16.msra.mxu1 %v317_v63 }
  0x98   :  { %v111_v9 = vpop.permute.xlu1 %110  ;;  %v109_v12 = vpop.permute.xlu0 %108 }
  0x99   :  { %v116_v25 = vsel %vm112_vm5, %v111_v9, %v105_v54  ;;  %v114_v30 = vsel %vm112_vm5, %v107_v53, %v109_v12  ;;  %v113_v35 = vsel %vm112_vm5, %v109_v12, %v111_v9  ;;  %v86_v9 = vsub.s32 1, %v856_v7 }
  0x9a   :  { %v133_v38 = vmul.f32 %v1007_v16, %v116_v25  ;;  %v135_v44 = vmul.f32 %v1010_v17, %v114_v30  ;;  %v136_v52 = vmul.f32 %v1013_v22, %v113_v35  ;;  %v1060_v7 = vrot.slane %v912_v49, %v867_v11 }
  0x9c   :  { %v140_v23 = vpop.permute.xlu1 %139  ;;  %v138_v24 = vpop.permute.xlu0 %137 }
  0x9d   :  { %v148_v26 = vsel %vm145_vm6, %v138_v24, %v140_v23 }
  0x9e   :  { %v167_v31 = vmul.f32 %v1002_v14, %v148_v26  ;;  %v1064_v26 = vrot.slane %v908_v46, %v867_v11 }
  0xa0   :  { %v144_v39 = vpop.permute.xlu1 %143  ;;  %v142_v40 = vpop.permute.xlu0 %141  ;;  %v312_v41 = vpack.c.bf16 %v167_v31, %v134_v29  ;;  %v1068_v29 = vrot.slane %v906_v43, %v867_v11 }
  0xa1   :  { %v149_v45 = vsel %vm145_vm6, %v144_v39, %v138_v24  ;;  %v146_v47 = vsel %vm145_vm6, %v142_v40, %v144_v39  ;;  %v147_v48 = vsel %vm145_vm6, %v140_v23, %v142_v40  ;;  %v1050_v23 = vrot.slane %v904_v42, %v867_v11 }
  0xa2   :  { %v166_v53 = vmul.f32 %v1020_v27, %v149_v45  ;;  %v168_v54 = vmul.f32 %v1023_v28, %v147_v48  ;;  %v169_v56 = vmul.f32 %v1030_v33, %v146_v47  ;;  %362 = vmatprep.subr.bf16.mxu0 %v312_v41  ;;  %v1054_v24 = vrot.slane %v904_v42, %v86_v9 }
  0xa3   :  { %v1078_v39 = vrot.slane %v908_v46, %v86_v9 }
  0xa4   :  { %v35_v58 = vpop.permute.xlu1 %34  ;;  %v33_v63 = vpop.permute.xlu0 %32  ;;  %v311_v5 = vpack.c.bf16 %v166_v53, %v133_v38  ;;  %v314_v6 = vpack.c.bf16 %v169_v56, %v136_v52  ;;  %v313_v8 = vpack.c.bf16 %v168_v54, %v135_v44  ;;  %v1075_v38 = vrot.slane %v912_v49, %v86_v9 }
  0xa5   :  { %v45_v25 = vsel %vm42_vm7, %v33_v63, %v35_v58  ;;  %v1085_v44 = vrot.slane %v906_v43, %v86_v9 }
  0xa6   :  { %363 = vmatpush1.bf16.msra.mxu0 %v311_v5  ;;  %403 = vmatprep.subr.bf16.mxu1 %v314_v6  ;;  %v68_v40 = vmul.f32 %v1050_v23, %v45_v25 }
  0xa7   :  { %404 = vmatpush1.bf16.msra.mxu1 %v313_v8 }
  0xa8   :  { %v39_v12 = vpop.permute.xlu1 %38  ;;  %v37_v15 = vpop.permute.xlu0 %36 }
  0xa9   :  { %v46_v42 = vsel %vm42_vm7, %v39_v12, %v33_v63  ;;  %v44_v11 = vsel %vm42_vm7, %v35_v58, %v37_v15  ;;  %v43_v45 = vsel %vm42_vm7, %v37_v15, %v39_v12  ;;  %v306_v12 = vld [vmem:[%s1311_s2] sm:$0xf] }
  0xaa   :  { %v67_v47 = vmul.f32 %v1060_v7, %v46_v42  ;;  %v69_v46 = vmul.f32 %v1064_v26, %v44_v11  ;;  %v70_v56 = vmul.f32 %v1068_v29, %v43_v45 }
  0xac   :  { %v74_v30 = vpop.permute.xlu1 %73  ;;  %v72_v31 = vpop.permute.xlu0 %71 }
  0xad   :  { %v82_v35 = vsel %vm79_vm8, %v72_v31, %v74_v30 }
  0xae   :  { %v101_v41 = vmul.f32 %v1054_v24, %v82_v35 }
  0xb0   :  { %v78_v49 = vpop.permute.xlu1 %77  ;;  %v76_v48 = vpop.permute.xlu0 %75  ;;  %v308_v52 = vpack.c.bf16 %v101_v41, %v68_v40 }
  0xb1   :  { %v83_v53 = vsel %vm79_vm8, %v78_v49, %v72_v31  ;;  %v80_v54 = vsel %vm79_vm8, %v76_v48, %v78_v49  ;;  %v81_v43 = vsel %vm79_vm8, %v74_v30, %v76_v48 }
  0xb2   :  { %v100_v58 = vmul.f32 %v1075_v38, %v83_v53  ;;  %v102_v63 = vmul.f32 %v1078_v39, %v81_v43  ;;  %v103_v5 = vmul.f32 %v1085_v44, %v80_v54  ;;  %364 = vmatprep.subr.bf16.mxu0 %v308_v52  ;;  %v585_v54 = vld [vmem:[%s1312_s5] sm:$0xff] }
  0xb4   :  { %v307_v6 = vpack.c.bf16 %v100_v58, %v67_v47  ;;  %v310_v8 = vpack.c.bf16 %v103_v5, %v70_v56  ;;  %v309_v9 = vpack.c.bf16 %v102_v63, %v69_v46 }
  0xb6   :  { %365 = vmatpush1.bf16.msra.mxu0 %v307_v6  ;;  %405 = vmatprep.subr.bf16.mxu1 %v310_v8 }
  0xb7   :  { %406 = vmatpush1.bf16.msra.mxu1 %v309_v9 }
  0xb9   :  { %705 = vmatmul.mubr.msk.bf16.vlgmr.msra.gmra.mxu0 %vm333_vm9, %v306_v12 }
  0xba   :  { %707 = vmatmul.mubr.msk.bf16.vlgmr.msra.gmra.mxu1 %vm333_vm9, %v306_v12  ;;  %638 = vmatprep.mubr.bf16.mxu0 %v729_v4 }
  0xbb   :  { %679 = vmatprep.mubr.bf16.mxu1 %v729_v4 }
  0xbd   :  { %v331_v15 = vpop.permute.xlu0 %330 }
 0x179   :  { %v384_v25 = vpop.f32.mrf.mxu0 }
 0x17a   :  { %v385_v30 = vadd.f32 %v384_v25, %v331_v15  ;;  %v425_v31 = vpop.f32.mrf.mxu1 }
 0x17b   :  { %v426_v42 = vadd.f32 %v425_v31, %v331_v15  ;;  %v386_v35 = vpop.f32.mrf.mxu0 }
 0x17c   :  { %v1108_v40 = vmax.f32 %v385_v30, 0.0  ;;  %v387_v11 = vadd.f32 %v386_v35, %v331_v15  ;;  %v427_v41 = vpop.f32.mrf.mxu1 }
 0x17d   :  { %v1110_v45 = vmax.f32 %v426_v42, 0.0  ;;  %v388_v47 = vpop.f32.mrf.mxu0  ;;  %v428_v52 = vadd.f32 %v427_v41, %v331_v15 }
 0x17e   :  { %v429_v49 = vpop.f32.mrf.mxu1  ;;  %548 = vrot.lane.b32.xlu1 %v1108_v40, %s722_s25  ;;  %v1116_v4 = vmax.f32 %v387_v11, 0.0 }
 0x17f   :  { %v389_v48 = vpop.f32.mrf.mxu0  ;;  %552 = vrot.lane.b32.xlu0 %v1110_v45, %s722_s25  ;;  %v1122_v53 = vmax.f32 %v428_v52, 0.0 }
 0x180   :  { %v430_v46 = vpop.f32.mrf.mxu1 }
 0x182   :  { %550 = vrot.lane.b32.xlu1 %v1116_v4, %s722_s25 }
 0x183   :  { %516 = vrot.lane.b32.xlu0 %v1108_v40, %s723_s30 }
 0x186   :  { %554 = vrot.lane.b32.xlu1 %v1122_v53, %s722_s25 }
 0x187   :  { %520 = vrot.lane.b32.xlu0 %v1110_v45, %s723_s30 }
 0x18a   :  { %518 = vrot.lane.b32.xlu1 %v1116_v4, %s723_s30 }
 0x18b   :  { %532 = vrot.lane.b32.xlu0 %v1108_v40, %s724_s0 }
 0x18e   :  { %522 = vrot.lane.b32.xlu1 %v1122_v53, %s723_s30 }
 0x18f   :  { %536 = vrot.lane.b32.xlu0 %v1110_v45, %s724_s0 }
 0x192   :  { %534 = vrot.lane.b32.xlu1 %v1116_v4, %s724_s0 }
 0x193   :  { %500 = vrot.lane.b32.xlu0 %v1108_v40, %s725_s7 }
 0x196   :  { %538 = vrot.lane.b32.xlu1 %v1122_v53, %s724_s0 }
 0x197   :  { %504 = vrot.lane.b32.xlu0 %v1110_v45, %s725_s7 }
 0x19a   :  { %502 = vrot.lane.b32.xlu1 %v1116_v4, %s725_s7 }
 0x19b   :  { %468 = vrot.lane.b32.xlu0 %v1108_v40, %s726_s8 }
 0x19e   :  { %506 = vrot.lane.b32.xlu1 %v1122_v53, %s725_s7 }
 0x19f   :  { %472 = vrot.lane.b32.xlu0 %v1110_v45, %s726_s8 }
 0x1a2   :  { %470 = vrot.lane.b32.xlu1 %v1116_v4, %s726_s8 }
 0x1a3   :  { %484 = vrot.lane.b32.xlu0 %v1108_v40, %s727_s9 }
 0x1a6   :  { %474 = vrot.lane.b32.xlu1 %v1122_v53, %s726_s8 }
 0x1a7   :  { %488 = vrot.lane.b32.xlu0 %v1110_v45, %s727_s9 }
 0x1aa   :  { %486 = vrot.lane.b32.xlu1 %v1116_v4, %s727_s9 }
 0x1ab   :  { %436 = vrot.lane.b32.xlu0 %v1108_v40, %s728_s10 }
 0x1ae   :  { %490 = vrot.lane.b32.xlu1 %v1122_v53, %s727_s9 }
 0x1af   :  { %440 = vrot.lane.b32.xlu0 %v1110_v45, %s728_s10 }
 0x1b2   :  { %438 = vrot.lane.b32.xlu1 %v1116_v4, %s728_s10 }
 0x1b3   :  { %452 = vrot.lane.b32.xlu0 %v1108_v40, %s730_s11 }
 0x1b6   :  { %442 = vrot.lane.b32.xlu1 %v1122_v53, %s728_s10 }
 0x1b7   :  { %456 = vrot.lane.b32.xlu0 %v1110_v45, %s730_s11 }
 0x1ba   :  { %454 = vrot.lane.b32.xlu1 %v1116_v4, %s730_s11 }
 0x1bb   :  { %588 = vperm.xlu0 %721, %v585_v54  }
 0x1be   :  { %458 = vrot.lane.b32.xlu1 %v1122_v53, %s730_s11 }
 0x1f0   :  { %v549_v43 = vpop.permute.xlu1 %548 }
 0x1f1   :  { %v553_v56 = vpop.permute.xlu0 %552 }
 0x1f4   :  { %v551_v58 = vpop.permute.xlu1 %550 }
 0x1f5   :  { %v557_v63 = vsel %vm277_vm0, %v551_v58, %v553_v56  ;;  %v558_v5 = vsel %vm277_vm0, %v549_v43, %v551_v58  ;;  %v517_v6 = vpop.permute.xlu0 %516 }
 0x1f6   :  { %v560_v8 = vmul.f32 %v558_v5, %v874_v19  ;;  %v561_v9 = vmul.f32 %v557_v63, %v877_v20 }
 0x1f8   :  { %v581_v12 = vpack.c.bf16 %v560_v8, %v560_v8  ;;  %v582_v15 = vpack.c.bf16 %v561_v9, %v561_v9  ;;  %v555_v25 = vpop.permute.xlu1 %554 }
 0x1f9   :  { %v556_v30 = vsel %vm277_vm0, %v553_v56, %v555_v25  ;;  %v559_v31 = vsel %vm277_vm0, %v555_v25, %v549_v43  ;;  %v521_v42 = vpop.permute.xlu0 %520 }
 0x1fa   :  { %v562_v35 = vmul.f32 %v556_v30, %v871_v18  ;;  %v563_v11 = vmul.f32 %v559_v31, %v880_v21  ;;  %708 = vmatprep.subr.msk.bf16.mxu0 %vm337_vm1, %v582_v15  ;;  %v595_v19 = vsel %vm337_vm1, %v581_v12, 0 }
 0x1fb   :  { %613 = vmatpush1.bf16.msra.mxu0 %v595_v19 }
 0x1fc   :  { %v583_v20 = vpack.c.bf16 %v562_v35, %v562_v35  ;;  %v584_v41 = vpack.c.bf16 %v563_v11, %v563_v11  ;;  %v519_v47 = vpop.permute.xlu1 %518 }
 0x1fd   :  { %v533_v49 = vpop.permute.xlu0 %532  ;;  %v525_v18 = vsel %vm211_vm3, %v519_v47, %v521_v42  ;;  %v526_v21 = vsel %vm211_vm3, %v517_v6, %v519_v47 }
 0x1fe   :  { %710 = vmatprep.subr.msk.bf16.mxu1 %vm337_vm1, %v584_v41  ;;  %v601_v48 = vsel %vm337_vm1, %v583_v20, 0  ;;  %v528_v63 = vmul.f32 %v526_v21, %v944_v62  ;;  %v529_v5 = vmul.f32 %v525_v18, %v920_v51 }
 0x1ff   :  { %654 = vmatpush1.bf16.msra.mxu1 %v601_v48 }
 0x200   :  { %v523_v52 = vpop.permute.xlu1 %522 }
 0x201   :  { %v537_v46 = vpop.permute.xlu0 %536  ;;  %v524_v12 = vsel %vm211_vm3, %v521_v42, %v523_v52  ;;  %v527_v15 = vsel %vm211_vm3, %v523_v52, %v517_v6 }
 0x204   :  { %v535_v54 = vpop.permute.xlu1 %534 }
 0x205   :  { %v541_v43 = vsel %vm244_vm2, %v535_v54, %v537_v46  ;;  %v542_v56 = vsel %vm244_vm2, %v533_v49, %v535_v54  ;;  %v501_v58 = vpop.permute.xlu0 %500 }
 0x206   :  { %v544_v8 = vmul.f32 %v542_v56, %v930_v57  ;;  %v545_v9 = vmul.f32 %v541_v43, %v938_v60  ;;  %v530_v57 = vmul.f32 %v524_v12, %v925_v55  ;;  %v531_v60 = vmul.f32 %v527_v15, %v917_v50 }
 0x208   :  { %v577_v25 = vpack.c.bf16 %v544_v8, %v528_v63  ;;  %v539_v30 = vpop.permute.xlu1 %538  ;;  %v578_v31 = vpack.c.bf16 %v545_v9, %v529_v5 }
 0x209   :  { %v540_v35 = vsel %vm244_vm2, %v537_v46, %v539_v30  ;;  %v543_v62 = vsel %vm244_vm2, %v539_v30, %v533_v49  ;;  %v505_v51 = vpop.permute.xlu0 %504 }
 0x20a   :  { %v546_v11 = vmul.f32 %v540_v35, %v941_v61  ;;  %v547_v42 = vmul.f32 %v543_v62, %v935_v59  ;;  %614 = vmatprep.subr.bf16.mxu0 %v578_v31 }
 0x20b   :  { %615 = vmatpush1.bf16.msra.mxu0 %v577_v25 }
 0x20c   :  { %v579_v6 = vpack.c.bf16 %v546_v11, %v530_v57  ;;  %v503_v19 = vpop.permute.xlu1 %502  ;;  %v580_v20 = vpack.c.bf16 %v547_v42, %v531_v60 }
 0x20d   :  { %v509_v41 = vsel %vm178_vm4, %v503_v19, %v505_v51  ;;  %v510_v47 = vsel %vm178_vm4, %v501_v58, %v503_v19  ;;  %v469_v49 = vpop.permute.xlu0 %468 }
 0x20e   :  { %v512_v55 = vmul.f32 %v510_v47, %v967_v32  ;;  %v513_v50 = vmul.f32 %v509_v41, %v975_v36  ;;  %655 = vmatprep.subr.bf16.mxu1 %v580_v20 }
 0x20f   :  { %656 = vmatpush1.bf16.msra.mxu1 %v579_v6 }
 0x210   :  { %v573_v59 = vpack.c.bf16 %v512_v55, %v1108_v40  ;;  %v507_v61 = vpop.permute.xlu1 %506  ;;  %v574_v48 = vpack.c.bf16 %v513_v50, %v1116_v4 }
 0x211   :  { %v508_v52 = vsel %vm178_vm4, %v505_v51, %v507_v61  ;;  %v511_v46 = vsel %vm178_vm4, %v507_v61, %v501_v58  ;;  %v473_v18 = vpop.permute.xlu0 %472 }
 0x212   :  { %v514_v21 = vmul.f32 %v508_v52, %v978_v37  ;;  %v515_v32 = vmul.f32 %v511_v46, %v970_v34  ;;  %616 = vmatprep.subr.bf16.mxu0 %v574_v48 }
 0x213   :  { %617 = vmatpush1.bf16.msra.mxu0 %v573_v59 }
 0x214   :  { %v575_v36 = vpack.c.bf16 %v514_v21, %v1110_v45  ;;  %v471_v54 = vpop.permute.xlu1 %470  ;;  %v576_v40 = vpack.c.bf16 %v515_v32, %v1122_v53 }
 0x215   :  { %v485_v43 = vpop.permute.xlu0 %484  ;;  %v478_v58 = vsel %vm112_vm5, %v469_v49, %v471_v54  ;;  %v477_v12 = vsel %vm112_vm5, %v471_v54, %v473_v18 }
 0x216   :  { %657 = vmatprep.subr.bf16.mxu1 %v576_v40  ;;  %v481_v5 = vmul.f32 %v478_v58, %v998_v13  ;;  %v482_v60 = vmul.f32 %v477_v12, %v1010_v17 }
 0x217   :  { %658 = vmatpush1.bf16.msra.mxu1 %v575_v36 }
 0x218   :  { %v475_v4 = vpop.permute.xlu1 %474 }
 0x219   :  { %v489_v56 = vpop.permute.xlu0 %488  ;;  %v476_v8 = vsel %vm112_vm5, %v473_v18, %v475_v4  ;;  %v479_v9 = vsel %vm112_vm5, %v475_v4, %v469_v49 }
 0x21a   :  { %v480_v35 = vmul.f32 %v479_v9, %v1007_v16  ;;  %v483_v62 = vmul.f32 %v476_v8, %v1013_v22 }
 0x21c   :  { %v487_v63 = vpop.permute.xlu1 %486 }
 0x21d   :  { %v494_v37 = vsel %vm145_vm6, %v485_v43, %v487_v63  ;;  %v437_v34 = vpop.permute.xlu0 %436  ;;  %v493_v45 = vsel %vm145_vm6, %v487_v63, %v489_v56 }
 0x21e   :  { %v497_v53 = vmul.f32 %v494_v37, %v1002_v14  ;;  %v498_v30 = vmul.f32 %v493_v45, %v1023_v28 }
 0x220   :  { %v491_v15 = vpop.permute.xlu1 %490  ;;  %v570_v25 = vpack.c.bf16 %v497_v53, %v481_v5  ;;  %v571_v6 = vpack.c.bf16 %v498_v30, %v482_v60 }
 0x221   :  { %v492_v13 = vsel %vm145_vm6, %v489_v56, %v491_v15  ;;  %v495_v31 = vsel %vm145_vm6, %v491_v15, %v485_v43  ;;  %v441_v14 = vpop.permute.xlu0 %440 }
 0x222   :  { %v496_v51 = vmul.f32 %v495_v31, %v1020_v27  ;;  %v499_v57 = vmul.f32 %v492_v13, %v1030_v33  ;;  %618 = vmatprep.subr.bf16.mxu0 %v570_v25 }
 0x224   :  { %v569_v11 = vpack.c.bf16 %v496_v51, %v480_v35  ;;  %v439_v28 = vpop.permute.xlu1 %438  ;;  %v572_v42 = vpack.c.bf16 %v499_v57, %v483_v62 }
 0x225   :  { %v453_v19 = vpop.permute.xlu0 %452  ;;  %v446_v16 = vsel %vm42_vm7, %v437_v34, %v439_v28  ;;  %v445_v50 = vsel %vm42_vm7, %v439_v28, %v441_v14 }
 0x226   :  { %619 = vmatpush1.bf16.msra.mxu0 %v569_v11  ;;  %659 = vmatprep.subr.bf16.mxu1 %v572_v42  ;;  %v449_v33 = vmul.f32 %v446_v16, %v1050_v23  ;;  %v450_v32 = vmul.f32 %v445_v50, %v1064_v26 }
 0x227   :  { %660 = vmatpush1.bf16.msra.mxu1 %v571_v6 }
 0x228   :  { %v443_v20 = vpop.permute.xlu1 %442 }
 0x229   :  { %v457_v41 = vpop.permute.xlu0 %456  ;;  %v444_v49 = vsel %vm42_vm7, %v441_v14, %v443_v20  ;;  %v447_v55 = vsel %vm42_vm7, %v443_v20, %v437_v34 }
 0x22a   :  { %v451_v46 = vmul.f32 %v444_v49, %v1068_v29 }
 0x22c   :  { %v455_v22 = vpop.permute.xlu1 %454 }
 0x22d   :  { %v462_v27 = vsel %vm79_vm8, %v453_v19, %v455_v22  ;;  %v461_v17 = vsel %vm79_vm8, %v455_v22, %v457_v41 }
 0x22e   :  { %v465_v47 = vmul.f32 %v462_v27, %v1054_v24  ;;  %v466_v48 = vmul.f32 %v461_v17, %v1078_v39  ;;  %v448_v24 = vmul.f32 %v447_v55, %v1060_v7 }
 0x230   :  { %v459_v59 = vpop.permute.xlu1 %458  ;;  %v566_v61 = vpack.c.bf16 %v465_v47, %v449_v33  ;;  %v567_v39 = vpack.c.bf16 %v466_v48, %v450_v32 }
 0x231   :  { %v460_v23 = vsel %vm79_vm8, %v457_v41, %v459_v59  ;;  %v463_v52 = vsel %vm79_vm8, %v459_v59, %v453_v19 }
 0x232   :  { %v464_v18 = vmul.f32 %v463_v52, %v1075_v38  ;;  %v467_v21 = vmul.f32 %v460_v23, %v1085_v44  ;;  %620 = vmatprep.subr.bf16.mxu0 %v566_v61 }
 0x234   :  { %v565_v36 = vpack.c.bf16 %v464_v18, %v448_v24  ;;  %v568_v54 = vpack.c.bf16 %v467_v21, %v451_v46 }
 0x236   :  { %621 = vmatpush1.bf16.msra.mxu0 %v565_v36  ;;  %661 = vmatprep.subr.bf16.mxu1 %v568_v54  ;;  %v589_v7 = vpop.permute.xlu0 %588 }
 0x237   :  { %662 = vmatpush1.bf16.msra.mxu1 %v567_v39 }
 0x239   :  { %709 = vmatmul.mubr.msk.bf16.vlgmr.msra.gmra.mxu0 %vm333_vm9, %v564_v10 }
 0x23a   :  { %711 = vmatmul.mubr.msk.bf16.vlgmr.msra.gmra.mxu1 %vm333_vm9, %v564_v10 }
 0x2f9   :  { %v640_v29 = vpop.f32.mrf.mxu0 }
 0x2fa   :  { %v641_v38 = vadd.f32 %v640_v29, %v589_v7  ;;  %v681_v44 = vpop.f32.mrf.mxu1 }
 0x2fb   :  { %v682_v40 = vadd.f32 %v681_v44, %v589_v7  ;;  %v642_v26 = vpop.f32.mrf.mxu0 }
 0x2fc   :  { %v688_v43 = vadd.f32 %v641_v38, %v774_v1  ;;  %v643_v4 = vadd.f32 %v642_v26, %v589_v7  ;;  %v683_v56 = vpop.f32.mrf.mxu1 }
 0x2fd   :  { %v690_v58 = vadd.f32 %v682_v40, %v769_v0  ;;  %v684_v63 = vadd.f32 %v683_v56, %v589_v7  ;;  %v644_v37 = vpop.f32.mrf.mxu0 }
 0x2fe   :  { %v692_v34 = vmax.f32 %v688_v43, 0.0  ;;  %v689_v5 = vadd.f32 %v643_v4, %v788_v3  ;;  %v685_v45 = vpop.f32.mrf.mxu1 }
 0x2ff   :  { %v694_v53 = vmax.f32 %v690_v58, 0.0  ;;  %v691_v8 = vadd.f32 %v684_v63, %v783_v2  ;;  %v645_v9 = vpop.f32.mrf.mxu0 }
 0x300   :  { %696 = vst [vmem:[%s1314_s6] sm:$0xff] %v692_v34  ;;  %v693_v12 = vmax.f32 %v689_v5, 0.0  ;;  %v686_v1 = vpop.f32.mrf.mxu1 }
 0x301   :  { %698 = vst [vmem:[%s1314_s6 + $0x10] sm:$0xff] %v694_v53  ;;  %v695_v0 = vmax.f32 %v691_v8, 0.0 }
 0x302   :  { %697 = vst [vmem:[%s1314_s6 + $0x8] sm:$0xff] %v693_v12 }
 0x303   :  { %699 = vst [vmem:[%s1314_s6 + $0x18] sm:$0xff] %v695_v0 }

</bundles_post_ra>
